<compile_context>
chip_gen: v5e
topology: v5e:2x2
jax: 0.10.0
libtpu: 0.0.40
codegen_flags: <defaults>
</compile_context>

<pallas_src>
import functools

import jax
import jax.numpy as jnp
from jax import lax
from jax.experimental import pallas as pl
from jax.experimental.pallas import tpu as pltpu


def _round_up(x, m):
    return ((x + m - 1) // m) * m


def _supcon_kernel(lq_ref, lk_ref, q_ref, k_ref, o_ref,
                   m_acc, l_acc, spl_acc, cnt_acc,
                   *, n_valid, inv_temp, loss_scale):
    """One (query-tile, key-tile) grid step of the online SupCon pass."""
    qi = pl.program_id(0)
    ki = pl.program_id(1)
    n_k = pl.num_programs(1)
    tq = q_ref.shape[0]
    tk = k_ref.shape[0]

    @pl.when(ki == 0)
    def _init():
        m_acc[...] = jnp.full_like(m_acc, -jnp.inf)
        l_acc[...] = jnp.zeros_like(l_acc)
        spl_acc[...] = jnp.zeros_like(spl_acc)
        cnt_acc[...] = jnp.zeros_like(cnt_acc)

    # Pre-scale the query tile by 1/temperature: O(tq*D) instead of an N^2 multiply.
    q = q_ref[...] * inv_temp

    # MXU matmul contracting D of both operands (no transpose materialized).
    s = lax.dot_general(
        q, k_ref[...],
        dimension_numbers=(((1,), (1,)), ((), ())),
        preferred_element_type=jnp.float32,
    )  # [tq, tk] f32 scaled logits

    # Cheap masks from O(tile) index/label vectors ([tq,1] vs [1,tk] broadcast compares).
    q_idx = qi * tq + lax.broadcasted_iota(jnp.int32, (tq, 1), 0)
    k_idx = ki * tk + lax.broadcasted_iota(jnp.int32, (1, tk), 1)
    valid_k = k_idx < n_valid                          # [1, tk] : drop padded columns
    not_self = q_idx != k_idx                          # [tq, tk]: exclude self-contrast
    denom_mask = jnp.logical_and(not_self, valid_k)
    same_label = lq_ref[...] == lk_ref[...]            # [tq,1] == [1,tk] -> [tq,tk]
    pos_mask = jnp.logical_and(same_label, denom_mask)

    # Online log-sum-exp over the denominator set (all valid non-self columns).
    m_prev = m_acc[...]
    m_new = jnp.maximum(m_prev, jnp.max(s, axis=1, keepdims=True))
    alpha = jnp.exp(m_prev - m_new)
    e = jnp.where(denom_mask, jnp.exp(s - m_new), 0.0)
    l_acc[...] = alpha * l_acc[...] + jnp.sum(e, axis=1, keepdims=True)
    m_acc[...] = m_new

    # Positive-pair accumulators (independent of the max shift).
    spl_acc[...] += jnp.sum(jnp.where(pos_mask, s, 0.0), axis=1, keepdims=True)
    cnt_acc[...] += jnp.sum(pos_mask.astype(jnp.float32), axis=1, keepdims=True)

    @pl.when(ki == n_k - 1)
    def _finalize():
        log_denom = m_acc[...] + jnp.log(l_acc[...])
        mean_log_prob_pos = spl_acc[...] / cnt_acc[...] - log_denom
        o_ref[...] = (-loss_scale * mean_log_prob_pos).astype(o_ref.dtype)


def supcon_loss(features, labels=None, mask=None, temperature=0.07,
                contrast_mode='all', base_temperature=0.07, block=256):
    """features: [bsz, n_views, ...]; optional labels: [bsz].
    contrast_mode='all'. Returns a scalar float32 loss."""
    if features.ndim < 3:
        raise ValueError("`features` needs to be [bsz, n_views, ...]")
    if features.ndim > 3:
        features = features.reshape(features.shape[0], features.shape[1], -1)
    if labels is not None and mask is not None:
        raise ValueError("Cannot define both `labels` and `mask`")
    if mask is not None:
        # TODO(synk): explicit [bsz, bsz] contrastive mask input is not implemented.
        raise NotImplementedError("explicit `mask` not supported")
    if contrast_mode != 'all':
        # TODO(synk): contrast_mode='one' is not implemented.
        raise NotImplementedError("only contrast_mode='all' is supported")

    bsz, n_views, dim = features.shape
    N = bsz * n_views

    # Batch-major flatten (the mean loss is invariant to anchor ordering, so no
    # transpose / HBM round trip).  Keep the input dtype (bf16 stays bf16 end-to-end).
    cf = features.reshape(N, dim)

    # Per-row ids defining the positive set: same id == positive (minus self).
    if labels is None:
        sample_ids = jnp.arange(bsz, dtype=jnp.int32)           # SimCLR: same sample
    else:
        sample_ids = jnp.asarray(labels, dtype=jnp.int32).reshape(-1)
        if sample_ids.shape[0] != bsz:
            raise ValueError("Num of labels does not match num of features")
    row_ids = jnp.repeat(sample_ids, n_views)                   # [N] batch-major

    # Tile / padding choices:
    #   * T is a multiple of 128 (multi-tile case) or T == N_pad (single-tile case),
    #     so every BlockSpec satisfies the (8, 128) divisibility rules.
    #   * D padded to a multiple of 128.
    n8 = _round_up(N, 8)
    if n8 <= block:
        T = n8
    else:
        T = max(128, (int(block) // 128) * 128)
    N_pad = _round_up(N, T)
    D_pad = _round_up(dim, 128)
    if (N_pad, D_pad) != (N, dim):
        cf = jnp.pad(cf, ((0, N_pad - N), (0, D_pad - dim)))
    if N_pad != N:
        row_ids = jnp.pad(row_ids, (0, N_pad - N), constant_values=-1)
    ids_col = row_ids.reshape(N_pad, 1)      # query-row layout
    ids_row = row_ids.reshape(1, N_pad)      # key-column layout (lane-major)

    kernel = functools.partial(
        _supcon_kernel,
        n_valid=N,
        inv_temp=float(1.0 / temperature),
        loss_scale=float(temperature / base_temperature),
    )

    grid = (N_pad // T, N_pad // T)
    itemsize = jnp.dtype(cf.dtype).itemsize
    cost = pl.CostEstimate(
        flops=2 * N_pad * N_pad * D_pad,
        transcendentals=N_pad * N_pad,
        bytes_accessed=(N_pad * D_pad * itemsize                 # query tiles (resident)
                        + grid[0] * N_pad * D_pad * itemsize     # streamed key tiles
                        + 2 * N_pad * 4                          # label vectors
                        + N_pad * 4),                            # per-anchor output
    )

    per_anchor = pl.pallas_call(
        kernel,
        out_shape=jax.ShapeDtypeStruct((N_pad, 1), jnp.float32),
        grid_spec=pltpu.PrefetchScalarGridSpec(
            num_scalar_prefetch=0,
            grid=grid,
            in_specs=[
                pl.BlockSpec((T, 1), lambda qi, ki: (qi, 0)),       # query-row ids
                pl.BlockSpec((1, T), lambda qi, ki: (0, ki)),       # key-column ids
                pl.BlockSpec((T, D_pad), lambda qi, ki: (qi, 0)),   # query tile (resident)
                pl.BlockSpec((T, D_pad), lambda qi, ki: (ki, 0)),   # key tile (streamed)
            ],
            out_specs=pl.BlockSpec((T, 1), lambda qi, ki: (qi, 0)),
            scratch_shapes=[
                pltpu.VMEM((T, 1), jnp.float32),   # running row max
                pltpu.VMEM((T, 1), jnp.float32),   # running sum-exp
                pltpu.VMEM((T, 1), jnp.float32),   # sum(pos * logit)
                pltpu.VMEM((T, 1), jnp.float32),   # pos count
            ],
        ),
        compiler_params=pltpu.CompilerParams(
            dimension_semantics=("parallel", "arbitrary"),
            vmem_limit_bytes=32 * 1024 * 1024,
        ),
        cost_estimate=cost,
    )(ids_col, ids_row, cf, cf)

    # Drop padded rows, then the tiny final mean outside the kernel.
    return jnp.mean(per_anchor[:N, 0])


def _supcon_loss_ref(features, labels=None, temperature=0.07, base_temperature=0.07):
    """Pure-JAX reference mirroring the PyTorch forward (contrast_mode='all')."""
    bsz, n_views, dim = features.shape
    cf = jnp.transpose(features, (1, 0, 2)).reshape(n_views * bsz, dim).astype(jnp.float32)
    N = n_views * bsz
    if labels is None:
        mask_b = jnp.eye(bsz, dtype=jnp.float32)
    else:
        lab = jnp.asarray(labels).reshape(-1, 1)
        mask_b = (lab == lab.T).astype(jnp.float32)
    logits = cf @ cf.T / temperature
    logits = logits - jnp.max(logits, axis=1, keepdims=True)
    mask = jnp.tile(mask_b, (n_views, n_views))
    logits_mask = 1.0 - jnp.eye(N, dtype=jnp.float32)
    mask = mask * logits_mask
    exp_logits = jnp.exp(logits) * logits_mask
    log_prob = logits - jnp.log(jnp.sum(exp_logits, axis=1, keepdims=True))
    mean_log_prob_pos = jnp.sum(mask * log_prob, axis=1) / jnp.sum(mask, axis=1)
    loss = -(temperature / base_temperature) * mean_log_prob_pos
    return jnp.mean(loss)


if __name__ == "__main__":
    key = jax.random.PRNGKey(0)
    k1, k2, k3, k4 = jax.random.split(key, 4)

    # 1) SimCLR path (labels=None), single tile: [bsz=8, n_views=2, dim=32].
    feats = jax.random.normal(k1, (8, 2, 32), dtype=jnp.float32)
    feats = feats / jnp.linalg.norm(feats, axis=-1, keepdims=True)
    loss = supcon_loss(feats)
    jax.block_until_ready(loss)
    loss_ref = _supcon_loss_ref(feats)
    assert jnp.allclose(loss, loss_ref, rtol=1e-4, atol=1e-4), (loss, loss_ref)

    # 2) Multi-tile / padded path: N=144 -> T=128, N_pad=256, grid 2x2.
    feats2 = jax.random.normal(k2, (72, 2, 72), dtype=jnp.float32)
    feats2 = feats2 / jnp.linalg.norm(feats2, axis=-1, keepdims=True)
    loss2 = supcon_loss(feats2, block=128)
    jax.block_until_ready(loss2)
    loss_ref2 = _supcon_loss_ref(feats2)
    assert jnp.allclose(loss2, loss_ref2, rtol=1e-4, atol=1e-4), (loss2, loss_ref2)

    # 3) Supervised path with class labels.
    feats3 = jax.random.normal(k3, (10, 2, 48), dtype=jnp.float32)
    feats3 = feats3 / jnp.linalg.norm(feats3, axis=-1, keepdims=True)
    labels3 = jax.random.randint(k4, (10,), 0, 4)
    loss3 = supcon_loss(feats3, labels=labels3)
    jax.block_until_ready(loss3)
    loss_ref3 = _supcon_loss_ref(feats3, labels=labels3)
    assert jnp.allclose(loss3, loss_ref3, rtol=1e-4, atol=1e-4), (loss3, loss_ref3)

    print("KERNEL_OK")
</pallas_src>

<mosaic_0001>
module attributes {stable_mosaic.version = 11 : i64} {
  func.func @_supcon_kernel(%arg0: i32, %arg1: i32, %arg2: memref<16x1xi32, #tpu.memory_space<vmem>>, %arg3: memref<1x16xi32, #tpu.memory_space<vmem>>, %arg4: memref<16x128xf32, #tpu.memory_space<vmem>>, %arg5: memref<16x128xf32, #tpu.memory_space<vmem>>, %arg6: memref<16x1xf32, #tpu.memory_space<vmem>>, %arg7: memref<16x1xf32, #tpu.memory_space<vmem>>, %arg8: memref<16x1xf32, #tpu.memory_space<vmem>>, %arg9: memref<16x1xf32, #tpu.memory_space<vmem>>, %arg10: memref<16x1xf32, #tpu.memory_space<vmem>>) attributes {dimension_semantics = [#tpu.dimension_semantics<parallel>, #tpu.dimension_semantics<arbitrary>], iteration_bounds = array<i64: 1, 1>, scalar_prefetch = 0 : i64, scratch_operands = 4 : i64, tpu.core_type = #tpu.core_type<tc>, window_params = [{transform_indices = @transform_0, window_bounds = array<i64: 16, 1>}, {transform_indices = @transform_1, window_bounds = array<i64: 1, 16>}, {transform_indices = @transform_2, window_bounds = array<i64: 16, 128>}, {transform_indices = @transform_3, window_bounds = array<i64: 16, 128>}, {transform_indices = @transform_4, window_bounds = array<i64: 16, 1>}]} {
    %c0_i32 = arith.constant 0 : i32
    %0 = arith.cmpi eq, %arg1, %c0_i32 : i32
    %1 = arith.extui %0 : i1 to i32
    %c0_i32_0 = arith.constant 0 : i32
    %2 = arith.cmpi ne, %1, %c0_i32_0 : i32
    scf.if %2 {
      %cst_35 = arith.constant 0xFF800000 : f32
      %64 = vector.broadcast %cst_35 : f32 to vector<16x1xf32>
      %c0_36 = arith.constant 0 : index
      %c0_37 = arith.constant 0 : index
      %65 = vector.load %arg7[%c0_36, %c0_37] : memref<16x1xf32, #tpu.memory_space<vmem>>, vector<16x1xf32>
      tpu.vector_store %arg7[%c0_36, %c0_37], %64 {strides = array<i32>} : memref<16x1xf32, #tpu.memory_space<vmem>>, vector<16x1xf32>,
      %cst_38 = arith.constant 0.000000e+00 : f32
      %66 = vector.broadcast %cst_38 : f32 to vector<16x1xf32>
      %c0_39 = arith.constant 0 : index
      %c0_40 = arith.constant 0 : index
      %67 = vector.load %arg8[%c0_39, %c0_40] : memref<16x1xf32, #tpu.memory_space<vmem>>, vector<16x1xf32>
      tpu.vector_store %arg8[%c0_39, %c0_40], %66 {strides = array<i32>} : memref<16x1xf32, #tpu.memory_space<vmem>>, vector<16x1xf32>,
      %cst_41 = arith.constant 0.000000e+00 : f32
      %68 = vector.broadcast %cst_41 : f32 to vector<16x1xf32>
      %c0_42 = arith.constant 0 : index
      %c0_43 = arith.constant 0 : index
      %69 = vector.load %arg9[%c0_42, %c0_43] : memref<16x1xf32, #tpu.memory_space<vmem>>, vector<16x1xf32>
      tpu.vector_store %arg9[%c0_42, %c0_43], %68 {strides = array<i32>} : memref<16x1xf32, #tpu.memory_space<vmem>>, vector<16x1xf32>,
      %cst_44 = arith.constant 0.000000e+00 : f32
      %70 = vector.broadcast %cst_44 : f32 to vector<16x1xf32>
      %c0_45 = arith.constant 0 : index
      %c0_46 = arith.constant 0 : index
      %71 = vector.load %arg10[%c0_45, %c0_46] : memref<16x1xf32, #tpu.memory_space<vmem>>, vector<16x1xf32>
      tpu.vector_store %arg10[%c0_45, %c0_46], %70 {strides = array<i32>} : memref<16x1xf32, #tpu.memory_space<vmem>>, vector<16x1xf32>,
    } else {
    }
    %c0 = arith.constant 0 : index
    %c0_1 = arith.constant 0 : index
    %3 = vector.load %arg4[%c0, %c0_1] : memref<16x128xf32, #tpu.memory_space<vmem>>, vector<16x128xf32>
    %cst = arith.constant 14.2857141 : f32
    %4 = vector.broadcast %cst : f32 to vector<16x128xf32>
    %5 = arith.mulf %3, %4 : vector<16x128xf32>
    %c0_2 = arith.constant 0 : index
    %c0_3 = arith.constant 0 : index
    %6 = vector.load %arg5[%c0_2, %c0_3] : memref<16x128xf32, #tpu.memory_space<vmem>>, vector<16x128xf32>
    %cst_4 = arith.constant dense<0.000000e+00> : vector<16x16xf32>
    %7 = tpu.matmul %5, %6, %cst_4 {dimension_numbers = #tpu.dot_dimension_numbers<[1], [1], [0], [0], [0, 0, 1, 0], [], []>} : vector<16x128xf32>, vector<16x128xf32>, vector<16x16xf32> -> vector<16x16xf32>
    %c16_i32 = arith.constant 16 : i32
    %8 = arith.muli %arg0, %c16_i32 : i32
    %9 = tpu.iota {dimensions = array<i32: 0>} : vector<16x1xi32>
    %10 = vector.broadcast %8 : i32 to vector<16x1xi32>
    %11 = arith.addi %10, %9 : vector<16x1xi32>
    %c16_i32_5 = arith.constant 16 : i32
    %12 = arith.muli %arg1, %c16_i32_5 : i32
    %13 = tpu.iota {dimensions = array<i32: 1>} : vector<1x16xi32>
    %14 = vector.broadcast %12 : i32 to vector<1x16xi32>
    %15 = arith.addi %14, %13 : vector<1x16xi32>
    %c16_i32_6 = arith.constant 16 : i32
    %16 = vector.broadcast %c16_i32_6 : i32 to vector<1x16xi32>
    %17 = arith.cmpi slt, %15, %16 : vector<1x16xi32>
    %18 = vector.broadcast %11 : vector<16x1xi32> to vector<16x16xi32>
    %19 = vector.broadcast %15 : vector<1x16xi32> to vector<16x16xi32>
    %20 = arith.cmpi ne, %18, %19 : vector<16x16xi32>
    %21 = vector.broadcast %17 : vector<1x16xi1> to vector<16x16xi1>
    %22 = arith.andi %20, %21 : vector<16x16xi1>
    %c0_7 = arith.constant 0 : index
    %c0_8 = arith.constant 0 : index
    %23 = vector.load %arg2[%c0_7, %c0_8] : memref<16x1xi32, #tpu.memory_space<vmem>>, vector<16x1xi32>
    %c0_9 = arith.constant 0 : index
    %c0_10 = arith.constant 0 : index
    %24 = vector.load %arg3[%c0_9, %c0_10] : memref<1x16xi32, #tpu.memory_space<vmem>>, vector<1x16xi32>
    %25 = vector.broadcast %23 : vector<16x1xi32> to vector<16x16xi32>
    %26 = vector.broadcast %24 : vector<1x16xi32> to vector<16x16xi32>
    %27 = arith.cmpi eq, %25, %26 : vector<16x16xi32>
    %28 = arith.andi %27, %22 : vector<16x16xi1>
    %c0_11 = arith.constant 0 : index
    %c0_12 = arith.constant 0 : index
    %29 = vector.load %arg7[%c0_11, %c0_12] : memref<16x1xf32, #tpu.memory_space<vmem>>, vector<16x1xf32>
    %cst_13 = arith.constant dense<0xFF800000> : vector<16xf32>
    %30 = vector.multi_reduction <maximumf>, %7, %cst_13 [1] : vector<16x16xf32> to vector<16xf32>
    %31 = vector.shape_cast %30 : vector<16xf32> to vector<16x1xf32>
    %32 = arith.maximumf %29, %31 : vector<16x1xf32>
    %33 = arith.subf %29, %32 : vector<16x1xf32>
    %34 = math.exp %33 : vector<16x1xf32>
    %35 = vector.broadcast %32 : vector<16x1xf32> to vector<16x16xf32>
    %36 = arith.subf %7, %35 : vector<16x16xf32>
    %37 = math.exp %36 : vector<16x16xf32>
    %cst_14 = arith.constant 0.000000e+00 : f32
    %38 = vector.broadcast %cst_14 : f32 to vector<16x16xf32>
    %39 = arith.select %22, %37, %38 : vector<16x16xi1>, vector<16x16xf32>
    %c0_15 = arith.constant 0 : index
    %c0_16 = arith.constant 0 : index
    %40 = vector.load %arg8[%c0_15, %c0_16] : memref<16x1xf32, #tpu.memory_space<vmem>>, vector<16x1xf32>
    %41 = arith.mulf %34, %40 : vector<16x1xf32>
    %cst_17 = arith.constant dense<0.000000e+00> : vector<16xf32>
    %42 = vector.multi_reduction <add>, %39, %cst_17 [1] : vector<16x16xf32> to vector<16xf32>
    %43 = vector.shape_cast %42 : vector<16xf32> to vector<16x1xf32>
    %44 = arith.addf %41, %43 : vector<16x1xf32>
    %c0_18 = arith.constant 0 : index
    %c0_19 = arith.constant 0 : index
    %45 = vector.load %arg8[%c0_18, %c0_19] : memref<16x1xf32, #tpu.memory_space<vmem>>, vector<16x1xf32>
    tpu.vector_store %arg8[%c0_18, %c0_19], %44 {strides = array<i32>} : memref<16x1xf32, #tpu.memory_space<vmem>>, vector<16x1xf32>,
    %c0_20 = arith.constant 0 : index
    %c0_21 = arith.constant 0 : index
    %46 = vector.load %arg7[%c0_20, %c0_21] : memref<16x1xf32, #tpu.memory_space<vmem>>, vector<16x1xf32>
    tpu.vector_store %arg7[%c0_20, %c0_21], %32 {strides = array<i32>} : memref<16x1xf32, #tpu.memory_space<vmem>>, vector<16x1xf32>,
    %c0_22 = arith.constant 0 : index
    %c0_23 = arith.constant 0 : index
    %47 = vector.load %arg9[%c0_22, %c0_23] : memref<16x1xf32, #tpu.memory_space<vmem>>, vector<16x1xf32>
    %cst_24 = arith.constant 0.000000e+00 : f32
    %48 = vector.broadcast %cst_24 : f32 to vector<16x16xf32>
    %49 = arith.select %28, %7, %48 : vector<16x16xi1>, vector<16x16xf32>
    %cst_25 = arith.constant dense<0.000000e+00> : vector<16xf32>
    %50 = vector.multi_reduction <add>, %49, %cst_25 [1] : vector<16x16xf32> to vector<16xf32>
    %51 = vector.shape_cast %50 : vector<16xf32> to vector<16x1xf32>
    %52 = arith.addf %47, %51 : vector<16x1xf32>
    %c0_26 = arith.constant 0 : index
    %c0_27 = arith.constant 0 : index
    %53 = vector.load %arg9[%c0_26, %c0_27] : memref<16x1xf32, #tpu.memory_space<vmem>>, vector<16x1xf32>
    tpu.vector_store %arg9[%c0_26, %c0_27], %52 {strides = array<i32>} : memref<16x1xf32, #tpu.memory_space<vmem>>, vector<16x1xf32>,
    %c0_28 = arith.constant 0 : index
    %c0_29 = arith.constant 0 : index
    %54 = vector.load %arg10[%c0_28, %c0_29] : memref<16x1xf32, #tpu.memory_space<vmem>>, vector<16x1xf32>
    %55 = arith.extui %28 : vector<16x16xi1> to vector<16x16xi32>
    %56 = arith.sitofp %55 : vector<16x16xi32> to vector<16x16xf32>
    %cst_30 = arith.constant dense<0.000000e+00> : vector<16xf32>
    %57 = vector.multi_reduction <add>, %56, %cst_30 [1] : vector<16x16xf32> to vector<16xf32>
    %58 = vector.shape_cast %57 : vector<16xf32> to vector<16x1xf32>
    %59 = arith.addf %54, %58 : vector<16x1xf32>
    %c0_31 = arith.constant 0 : index
    %c0_32 = arith.constant 0 : index
    %60 = vector.load %arg10[%c0_31, %c0_32] : memref<16x1xf32, #tpu.memory_space<vmem>>, vector<16x1xf32>
    tpu.vector_store %arg10[%c0_31, %c0_32], %59 {strides = array<i32>} : memref<16x1xf32, #tpu.memory_space<vmem>>, vector<16x1xf32>,
    %c0_i32_33 = arith.constant 0 : i32
    %61 = arith.cmpi eq, %arg1, %c0_i32_33 : i32
    %62 = arith.extui %61 : i1 to i32
    %c0_i32_34 = arith.constant 0 : i32
    %63 = arith.cmpi ne, %62, %c0_i32_34 : i32
    scf.if %63 {
      %c0_35 = arith.constant 0 : index
      %c0_36 = arith.constant 0 : index
      %64 = vector.load %arg7[%c0_35, %c0_36] : memref<16x1xf32, #tpu.memory_space<vmem>>, vector<16x1xf32>
      %c0_37 = arith.constant 0 : index
      %c0_38 = arith.constant 0 : index
      %65 = vector.load %arg8[%c0_37, %c0_38] : memref<16x1xf32, #tpu.memory_space<vmem>>, vector<16x1xf32>
      %66 = math.log %65 : vector<16x1xf32>
      %67 = arith.addf %64, %66 : vector<16x1xf32>
      %c0_39 = arith.constant 0 : index
      %c0_40 = arith.constant 0 : index
      %68 = vector.load %arg9[%c0_39, %c0_40] : memref<16x1xf32, #tpu.memory_space<vmem>>, vector<16x1xf32>
      %c0_41 = arith.constant 0 : index
      %c0_42 = arith.constant 0 : index
      %69 = vector.load %arg10[%c0_41, %c0_42] : memref<16x1xf32, #tpu.memory_space<vmem>>, vector<16x1xf32>
      %70 = arith.divf %68, %69 : vector<16x1xf32>
      %71 = arith.subf %70, %67 : vector<16x1xf32>
      %cst_43 = arith.constant -1.000000e+00 : f32
      %72 = vector.broadcast %cst_43 : f32 to vector<16x1xf32>
      %73 = arith.mulf %72, %71 : vector<16x1xf32>
      %c0_44 = arith.constant 0 : index
      %c0_45 = arith.constant 0 : index
      %74 = vector.load %arg6[%c0_44, %c0_45] : memref<16x1xf32, #tpu.memory_space<vmem>>, vector<16x1xf32>
      tpu.vector_store %arg6[%c0_44, %c0_45], %73 {strides = array<i32>} : memref<16x1xf32, #tpu.memory_space<vmem>>, vector<16x1xf32>,
    } else {
    }
    return
  }
  func.func @transform_0(%arg0: i32, %arg1: i32) -> (i32, i32) {
    %c0_i32 = arith.constant 0 : i32
    %c0_i32_0 = arith.constant 0 : i32
    return %arg0, %c0_i32 : i32, i32
  }
  func.func @transform_1(%arg0: i32, %arg1: i32) -> (i32, i32) {
    %c0_i32 = arith.constant 0 : i32
    %c0_i32_0 = arith.constant 0 : i32
    return %c0_i32, %arg1 : i32, i32
  }
  func.func @transform_2(%arg0: i32, %arg1: i32) -> (i32, i32) {
    %c0_i32 = arith.constant 0 : i32
    %c0_i32_0 = arith.constant 0 : i32
    return %arg0, %c0_i32 : i32, i32
  }
  func.func @transform_3(%arg0: i32, %arg1: i32) -> (i32, i32) {
    %c0_i32 = arith.constant 0 : i32
    %c0_i32_0 = arith.constant 0 : i32
    return %arg1, %c0_i32 : i32, i32
  }
  func.func @transform_4(%arg0: i32, %arg1: i32) -> (i32, i32) {
    %c0_i32 = arith.constant 0 : i32
    %c0_i32_0 = arith.constant 0 : i32
    return %arg0, %c0_i32 : i32, i32
  }
}

</mosaic_0001>

<bundles_post_ra>
// kernel: tpu_custom_call.1
= control target key start
LH: loop header
LB: loop body
LE: loop exit
PB: predicated region body
PF: predicated region fallthrough
CT: control target
= control target key end

     0   :  { %9 = vsyncpa [#allocation7], 0  ;;  %s304_s18 = smov [#allocation6]   ;;  %s305_s20 = smov 128   ;;  %s429_s0 = inlined_call_operand.vmem [shape: s32[16,1], index: 0, kind: input, shape index: {}]   ;;  %s430_s1 = inlined_call_operand.vmem [shape: s32[1,16], index: 1, kind: input, shape index: {}]   ;;  %s431_s2 = inlined_call_operand.vmem [shape: f32[16,128], index: 2, kind: input, shape index: {}]   ;;  %s432_s3 = inlined_call_operand.hbm [shape: f32[16,128], index: 3, kind: input, shape index: {}]   ;;  %s433_s4 = inlined_call_operand.vmem [shape: f32[16,1], index: 4, kind: output, shape index: {}]  }
   0x1   :  { %s20_s17 = sshll.u32 %s432_s3, 4  ;;  %s22_s19 = sshll.u32 %s304_s18, 4  ;;  %s21_s17 = int_to_ptr.hbm [resolvable:$true] %s20_s17  ;;  %s23_s19 = int_to_ptr.vmem [resolvable:$true] %s22_s19 }
   0x2   :  { %s306_s21 = smov 8  }
   0x3   :  { %28 = dma.hbm_to_vmem [thread:$0]  %s21_s17, 256, %s23_s19, [#allocation7], %s305_s20, %s305_s20, %s306_s21  }
   0x4   :  { %302 = dma.done.wait [#allocation7], 256  }
   0x5   :  { %303 = vsyncadd [#allocation7], 4294967040  ;;  %v307_v0 = vmov 0   ;;  %v51_v1 = vld [vmem:[#allocation6 + $0x8] sm:$0xff]  ;;  %v46_v2 = vld [vmem:[%s431_s2] sm:$0xff]  ;;  %vm37_vm0 = vcmask 7168   ;;  %v76_v14 = vlaneseq }
   0x6   :  { %259 = vset.pattern.permute.xlu2 %v307_v0  ;;  %258 = vset.pattern.permute.xlu1 %v307_v0  ;;  %v47_v3 = vld [vmem:[%s431_s2 + $0x8] sm:$0xff]  ;;  %v94_v4 = vld [vmem:[%s429_s0] sm:$0xff]  ;;  %v48_v6 = vmul.f32 14.285714, %v46_v2  ;;  %v308_v9 = vmov -inf   ;;  %vm110_vm1 = vcmask 130048  }
   0x7   :  { %260 = vset.pattern.permute.xlu0 %v307_v0  ;;  %66 = vmatpush.xpose.msra.mxu0 %v51_v1  ;;  %v50_v5 = vld [vmem:[#allocation6] sm:$0xff]  ;;  %v49_v7 = vmul.f32 14.285714, %v47_v3  ;;  %v95_v8 = vld [vmem:[%s429_s0 + $0x8] sm:$0xff]  ;;  %38 = vst.msk [vmem:[#allocation2] sm:$0xff] %vm37_vm0, %v308_v9  ;;  %v309_v15 = vmov 0.0  }
   0x8   :  { %250 = vmatpush.xpose.msra.mxu1 %v51_v1  ;;  %98 = vperm.xlu2 %259, %v94_v4   ;;  %39 = vst.msk [vmem:[#allocation2 + $0x8] sm:$0xff] %vm37_vm0, %v308_v9  ;;  %v77_v16 = vshrl.u32 %v76_v14, 7  ;;  %v84_v17 = vand.u32 127, %v76_v14  ;;  %v261_v18 = vld [vmem:[%s430_s1] ss:$0 sm:$0xff] }
   0x9   :  { %40 = vst.msk [vmem:[#allocation3] sm:$0xff] %vm37_vm0, %v309_v15 }
   0xa   :  { %41 = vst.msk [vmem:[#allocation3 + $0x8] sm:$0xff] %vm37_vm0, %v309_v15  ;;  %vm87_vm2 = vcmp.lt.s32.totalorder %v84_v17, 16  ;;  %vm88_vm3 = vcmp.ne.s32.totalorder %v77_v16, %v84_v17  ;;  %v78_v32 = vadd.s32 8, %v77_v16 }
   0xb   :  { %67 = vmatpush.xpose.msra.mxu0 %v50_v5  ;;  %42 = vst.msk [vmem:[#allocation4] sm:$0xff] %vm37_vm0, %v309_v15  ;;  %vm370_vm4 = vmand %vm88_vm3, %vm87_vm2 }
   0xc   :  { %251 = vmatpush.xpose.msra.mxu1 %v50_v5  ;;  %43 = vst.msk [vmem:[#allocation4 + $0x8] sm:$0xff] %vm37_vm0, %v309_v15  ;;  %vm89_vm7 = vcmp.ne.s32.totalorder %v78_v32, %v84_v17 }
   0xd   :  { %44 = vst.msk [vmem:[#allocation5] sm:$0xff] %vm37_vm0, %v309_v15  ;;  %vm386_vm8 = vmand %vm89_vm7, %vm87_vm2 }
   0xe   :  { %68 = vmatmul.f32.vlgmr.msra.gmra.mxu0 %v48_v6  ;;  %45 = vst.msk [vmem:[#allocation5 + $0x8] sm:$0xff] %vm37_vm0, %v309_v15  ;;  %v108_v24 = vld [vmem:[#allocation2] sm:$0xff] }
   0xf   :  { %71 = vmatmul.f32.vlgmr.msra.gmra.mxu1 %v49_v7  ;;  %v109_v28 = vld [vmem:[#allocation2 + $0x8] sm:$0xff] }
  0x10   :  { %101 = vperm.xlu2 %259, %v95_v8   ;;  %v143_v0 = vld [vmem:[#allocation3] sm:$0xff] }
  0x11   :  { %v144_v7 = vld [vmem:[#allocation3 + $0x8] sm:$0xff] }
  0x14   :  { %v174_v42 = vld [vmem:[#allocation5] sm:$0xff] }
  0x15   :  { %v175_v57 = vld [vmem:[#allocation5 + $0x8] sm:$0xff] }
  0x62   :  { %v99_v19 = vpop.permute.xlu2 %98 }
  0x63   :  { %vm104_vm5 = vcmp.eq.s32.totalorder %v99_v19, %v261_v18 }
  0x64   :  { %vm376_vm6 = vmand %vm104_vm5, %vm370_vm4 }
  0x65   :  { %v248_v22 = vsel %vm376_vm6, 1.0, %v309_v15 }
  0x66   :  { %v180_v23 = vsel %vm110_vm1, %v248_v22, 0.0 }
  0x6a   :  { %v102_v33 = vpop.permute.xlu2 %101 }
  0x6b   :  { %vm105_vm9 = vcmp.eq.s32.totalorder %v102_v33, %v261_v18 }
  0x6c   :  { %vm392_vm10 = vmand %vm105_vm9, %vm386_vm8 }
  0x6d   :  { %v249_v36 = vsel %vm392_vm10, 1.0, %v309_v15  ;;  %v160_v15 = vld [vmem:[#allocation4] sm:$0xff] }
  0x6e   :  { %v183_v37 = vsel %vm110_vm1, %v249_v36, 0.0 }
  0x8b   :  { %v352_v10 = vpop.f32.mrf.mxu0 }
  0x8c   :  { %v111_v11 = vsel %vm110_vm1, %v352_v10, -inf  ;;  %v356_v12 = vpop.f32.mrf.mxu1  ;;  %v162_v53 = vsel %vm376_vm6, %v352_v10, 0.0 }
  0x8d   :  { %112 = vmax.xlane.f32.xlu0 %v111_v11  ;;  %v114_v13 = vsel %vm110_vm1, %v356_v12, -inf  ;;  %v164_v54 = vsel %vm110_vm1, %v162_v53, 0.0  ;;  %v163_v55 = vsel %vm392_vm10, %v356_v12, 0.0 }
  0x8e   :  { %v167_v56 = vsel %vm110_vm1, %v163_v55, 0.0 }
  0x95   :  { %115 = vmax.xlane.f32.xlu0 %v114_v13 }
  0x9d   :  { %181 = vadd.xlane.f32.xlu0 %v180_v23 }
 0x100   :  { %v113_v25 = vpop.xlane.xlu0 %112 }
 0x101   :  { %v117_v26 = vmax.f32 %v108_v24, %v113_v25 }
 0x103   :  { %v119_v27 = vsub.f32 %v108_v24, %v117_v26  ;;  %158 = vst.msk [vmem:[#allocation2] sm:$0xff] %vm37_vm0, %v117_v26  ;;  %127 = vperm.xlu1 %258, %v117_v26  }
 0x105   :  { %v121_v60 = vmul.f32 1.442695, %v119_v27  ;;  %v161_v27 = vld [vmem:[#allocation4 + $0x8] sm:$0xff] }
 0x108   :  { %v116_v29 = vpop.xlane.xlu0 %115 }
 0x109   :  { %v118_v30 = vmax.f32 %v109_v28, %v116_v29 }
 0x10a   :  { %v193_v33 = vld [vmem:[#allocation2] sm:$0xff] }
 0x10b   :  { %v120_v31 = vsub.f32 %v109_v28, %v118_v30  ;;  %159 = vst.msk [vmem:[#allocation2 + $0x8] sm:$0xff] %vm37_vm0, %v118_v30  ;;  %132 = vperm.xlu1 %258, %v118_v30  }
 0x10d   :  { %v123_v61 = vmul.f32 1.442695, %v120_v31 }
 0x110   :  { %v182_v41 = vpop.xlane.xlu0 %181 }
 0x111   :  { %v186_v43 = vadd.f32 %v182_v41, %v174_v42 }
 0x113   :  { %188 = vst.msk [vmem:[#allocation5] sm:$0xff] %vm37_vm0, %v186_v43 }
 0x11a   :  { %v205_v62 = vld [vmem:[#allocation5] sm:$0xff] }
 0x11b   :  { %vm212_vm11 = vweird.f32 %v205_v62  ;;  %v218_v20 = vand.u32 2147483648, %v205_v62  ;;  %v216_v24 = vand.u32 2147483647, %v205_v62 }
 0x11d   :  { %v219_v26 = vor.u32 1.1754944e-38, %v218_v20  ;;  %vm217_vm14 = vcmp.eq.f32.partialorder %v216_v24, 8.507059e+37 }
 0x135   :  { %184 = vadd.xlane.f32.xlu1 %v183_v37 }
 0x175   :  { %v128_v38 = vpop.permute.xlu1 %127 }
 0x176   :  { %v135_v39 = vsub.f32 %v352_v10, %v128_v38 }
 0x178   :  { %v137_v40 = vmul.f32 1.442695, %v135_v39 }
 0x17a   :  { %262 = vpow2.f32 %v137_v40 }
 0x17d   :  { %v133_v44 = vpop.permute.xlu1 %132 }
 0x17e   :  { %v136_v45 = vsub.f32 %v356_v12, %v133_v44 }
 0x180   :  { %v263_v46 = vpop.eup %262  ;;  %v139_v47 = vmul.f32 1.442695, %v136_v45 }
 0x181   :  { %v141_v48 = vsel %vm370_vm4, %v263_v46, 0.0 }
 0x182   :  { %264 = vpow2.f32 %v139_v47  ;;  %v147_v49 = vsel %vm110_vm1, %v141_v48, 0.0  ;;  %v194_v47 = vld [vmem:[#allocation2 + $0x8] sm:$0xff] }
 0x183   :  { %148 = vadd.xlane.f32.xlu2 %v147_v49  ;;  %266 = vpow2.f32 %v121_v60 }
 0x184   :  { %268 = vpow2.f32 %v123_v61 }
 0x185   :  { %270 = vrcp.f32 %v205_v62 }
 0x188   :  { %v265_v50 = vpop.eup %264 }
 0x189   :  { %v142_v51 = vsel %vm386_vm8, %v265_v50, 0.0  ;;  %v267_v63 = vpop.eup %266 }
 0x18a   :  { %v150_v52 = vsel %vm110_vm1, %v142_v51, 0.0  ;;  %v145_v1 = vmul.f32 %v267_v63, %v143_v0  ;;  %v269_v4 = vpop.eup %268 }
 0x18b   :  { %151 = vadd.xlane.f32.xlu0 %v150_v52  ;;  %v271_v6 = vpop.eup %270  ;;  %v146_v9 = vmul.f32 %v269_v4, %v144_v7 }
 0x18c   :  { %v208_v8 = vmul.f32 %v271_v6, %v205_v62  ;;  %vm213_vm12 = vweird.f32 %v271_v6 }
 0x18d   :  { %vm214_vm13 = vmor %vm212_vm11, %vm213_vm12 }
 0x18e   :  { %v209_v12 = vsub.f32 1.0, %v208_v8 }
 0x190   :  { %v210_v16 = vmul.f32 %v271_v6, %v209_v12 }
 0x192   :  { %v211_v23 = vadd.f32 %v271_v6, %v210_v16 }
 0x193   :  { %165 = vadd.xlane.f32.xlu0 %v164_v54 }
 0x194   :  { %v215_v30 = vsel %vm214_vm13, %v271_v6, %v211_v23 }
 0x195   :  { %v220_v35 = vsel %vm217_vm14, %v219_v26, %v215_v30 }
 0x19b   :  { %168 = vadd.xlane.f32.xlu0 %v167_v56 }
 0x1a8   :  { %v185_v58 = vpop.xlane.xlu1 %184 }
 0x1a9   :  { %v187_v59 = vadd.f32 %v185_v58, %v175_v57 }
 0x1ab   :  { %189 = vst.msk [vmem:[#allocation5 + $0x8] sm:$0xff] %vm37_vm0, %v187_v59 }
 0x1b2   :  { %v206_v5 = vld [vmem:[#allocation5 + $0x8] sm:$0xff] }
 0x1b3   :  { %272 = vrcp.f32 %v206_v5  ;;  %vm227_vm15 = vweird.f32 %v206_v5  ;;  %v233_v34 = vand.u32 2147483648, %v206_v5  ;;  %v231_v40 = vand.u32 2147483647, %v206_v5 }
 0x1b5   :  { %v234_v43 = vor.u32 1.1754944e-38, %v233_v34  ;;  %vm232_vm3 = vcmp.eq.f32.partialorder %v231_v40, 8.507059e+37 }
 0x1b9   :  { %v273_v14 = vpop.eup %272 }
 0x1ba   :  { %v223_v17 = vmul.f32 %v273_v14, %v206_v5  ;;  %vm228_vm1 = vweird.f32 %v273_v14 }
 0x1bb   :  { %vm229_vm2 = vmor %vm227_vm15, %vm228_vm1 }
 0x1bc   :  { %v224_v21 = vsub.f32 1.0, %v223_v17 }
 0x1be   :  { %v225_v28 = vmul.f32 %v273_v14, %v224_v21 }
 0x1c0   :  { %v226_v39 = vadd.f32 %v273_v14, %v225_v28 }
 0x1c2   :  { %v230_v46 = vsel %vm229_vm2, %v273_v14, %v226_v39 }
 0x1c3   :  { %v235_v49 = vsel %vm232_vm3, %v234_v43, %v230_v46 }
 0x1f6   :  { %v149_v2 = vpop.xlane.xlu2 %148 }
 0x1f7   :  { %v153_v3 = vadd.f32 %v149_v2, %v145_v1 }
 0x1f9   :  { %156 = vst.msk [vmem:[#allocation3] sm:$0xff] %vm37_vm0, %v153_v3 }
 0x1fe   :  { %v152_v10 = vpop.xlane.xlu0 %151 }
 0x1ff   :  { %v154_v11 = vadd.f32 %v152_v10, %v146_v9 }
 0x200   :  { %v195_v13 = vld [vmem:[#allocation3] sm:$0xff] }
 0x201   :  { %157 = vst.msk [vmem:[#allocation3 + $0x8] sm:$0xff] %vm37_vm0, %v154_v11  ;;  %274 = vlog2.f32 %v195_v13 }
 0x206   :  { %v166_v18 = vpop.xlane.xlu0 %165 }
 0x207   :  { %v170_v19 = vadd.f32 %v166_v18, %v160_v15  ;;  %v275_v25 = vpop.eup %274 }
 0x208   :  { %v196_v22 = vld [vmem:[#allocation3 + $0x8] sm:$0xff]  ;;  %v198_v29 = vmul.f32 0.6931472, %v275_v25 }
 0x209   :  { %172 = vst.msk [vmem:[#allocation4] sm:$0xff] %vm37_vm0, %v170_v19  ;;  %276 = vlog2.f32 %v196_v22 }
 0x20a   :  { %v201_v37 = vadd.f32 %v198_v29, %v193_v33 }
 0x20e   :  { %v169_v31 = vpop.xlane.xlu0 %168 }
 0x20f   :  { %v171_v32 = vadd.f32 %v169_v31, %v161_v27  ;;  %v277_v41 = vpop.eup %276 }
 0x210   :  { %v203_v36 = vld [vmem:[#allocation4] sm:$0xff]  ;;  %v200_v44 = vmul.f32 0.6931472, %v277_v41 }
 0x211   :  { %v221_v38 = vmul.f32 %v220_v35, %v203_v36  ;;  %173 = vst.msk [vmem:[#allocation4 + $0x8] sm:$0xff] %vm37_vm0, %v171_v32 }
 0x212   :  { %v202_v50 = vadd.f32 %v200_v44, %v194_v47 }
 0x213   :  { %v237_v42 = vsub.f32 %v221_v38, %v201_v37 }
 0x215   :  { %v239_v45 = vmul.f32 -1.0, %v237_v42 }
 0x217   :  { %241 = vst.msk [vmem:[%s433_s4] sm:$0xff] %vm37_vm0, %v239_v45 }
 0x218   :  { %v204_v48 = vld [vmem:[#allocation4 + $0x8] sm:$0xff] }
 0x219   :  { %v236_v51 = vmul.f32 %v235_v49, %v204_v48 }
 0x21b   :  { %v238_v52 = vsub.f32 %v236_v51, %v202_v50 }
 0x21d   :  { %v240_v53 = vmul.f32 -1.0, %v238_v52 }
 0x21f   :  { %242 = vst.msk [vmem:[%s433_s4 + $0x8] sm:$0xff] %vm37_vm0, %v240_v53 }
 0x220   :  { %247 = vsyncpa [#allocation7], 1 }

</bundles_post_ra>
